<compile_context>
chip_gen: v7x
topology: tpu7x:2x2x1
jax: 0.10.0
libtpu: 0.0.40
codegen_flags: <defaults>
</compile_context>

<pallas_src>
import functools

import jax
import jax.numpy as jnp
from jax import lax
from jax.experimental import pallas as pl
from jax.experimental.pallas import tpu as pltpu


def sa_block_kernel(gamma_ref,     # SMEM (1, 1)
                    x_ref,         # VMEM (1, C, tq)   original x (residual), f32
                    q_ref,         # VMEM (1, Kd, tq)  query projection
                    k_ref,         # VMEM (1, Kd, tk)  key projection
                    v_ref,         # VMEM (1, C+1, tk) value projection + ones row
                    o_ref,         # VMEM (1, C, tq)
                    mmax_scr,      # VMEM (1, tq)      running max
                    acc_scr,       # VMEM (C+1, tq)    rows 0..C-1: output acc, row C: sum(p)
                    *, exp_dtype, approx_recip):
    ki = pl.program_id(2)

    @pl.when(ki == 0)
    def _init():
        mmax_scr[...] = jnp.full(mmax_scr.shape, -jnp.inf, dtype=mmax_scr.dtype)
        acc_scr[...] = jnp.zeros(acc_scr.shape, dtype=acc_scr.dtype)

    q = q_ref[0]                                                     # (Kd, tq)
    k = k_ref[0]                                                     # (Kd, tk)
    v = v_ref[0]                                                     # (C+1, tk)

    # Energy block in (kv, q) orientation: s[j, i] = k[:, j] . q[:, i].
    # Contract over the channel axis directly — no transposed operand copy.
    s = lax.dot_general(k, q, (((0,), (0,)), ((), ())),
                        preferred_element_type=jnp.float32)          # (tk, tq)

    # Online softmax over the kv (sublane) axis.
    m_prev = mmax_scr[...]                                           # (1, tq)
    m_new = jnp.maximum(m_prev, jnp.max(s, axis=0, keepdims=True))   # (1, tq)
    alpha = jnp.exp(m_prev - m_new)                                  # (1, tq), f32
    p = jnp.exp((s - m_new).astype(exp_dtype))                       # (tk, tq)
    mmax_scr[...] = m_new

    # Fused accumulate on the MXU: rows 0..C-1 are the unnormalized output,
    # row C (ones row of v) is the running softmax denominator sum(p).
    acc_scr[...] = alpha * acc_scr[...] + jnp.dot(
        v, p.astype(v.dtype), preferred_element_type=jnp.float32)    # (C+1, tq)

    @pl.when(ki == pl.num_programs(2) - 1)
    def _finalize():
        C = o_ref.shape[1]
        l = acc_scr[pl.ds(C, 1), :]                                  # (1, tq)
        inv_l = pl.reciprocal(l, approx=approx_recip)                # EUP
        out = acc_scr[pl.ds(0, C), :] * inv_l                        # (C, tq)
        o_ref[0] = gamma_ref[0, 0] * out + x_ref[0]


def _pick_tile(n):
    # v7x-safe default (64 MiB VMEM); on v5e/v6e pass tile=512 explicitly.
    for t in (256, 128):
        if n % t == 0:
            return t
    return n


@functools.partial(
    jax.jit,
    static_argnames=("use_bf16_mxu", "bf16_exp", "approx_recip", "tile",
                     "fold_threshold", "vmem_limit_mb"))
def sa_block_forward(x_nchw, params, *, use_bf16_mxu=True, bf16_exp=False,
                     approx_recip=None, tile=None, fold_threshold=32,
                     vmem_limit_mb=32):
    """x_nchw: (B, C, H, W) float32.  Returns (B, C, H, W).

    use_bf16_mxu: bf16 operands (f32 accumulate) for the two big matmuls and
                  bf16 q/k/v streams in HBM.
    bf16_exp:     bf16 exp for the attention weights (enable on v6e/v7x only;
                  keep False on v5e — no bf16 EUP there).
    """
    B, C, H, W = x_nchw.shape
    N = H * W
    x = x_nchw.reshape(B, C, N)          # free reshape; N sits on the lane axis

    wq, bq = params["wq"], params["bq"]  # (C//8, C), (C//8,)
    wk, bk = params["wk"], params["bk"]  # (C//8, C), (C//8,)
    wv, bv = params["wv"], params["bv"]  # (C, C),   (C,)
    gamma = params["gamma"]              # (1, 1)
    C8 = wq.shape[0]

    if approx_recip is None:
        approx_recip = bool(use_bf16_mxu)
    compute_dtype = jnp.bfloat16 if use_bf16_mxu else jnp.float32
    exp_dtype = jnp.bfloat16 if bf16_exp else jnp.float32

    # ---- Hoisted projections: done once here, not n_q times in the kernel. ----
    if C8 >= fold_threshold:
        # Production path: contract the N^2 energy over C/8 (8x fewer FLOPs).
        q = jnp.einsum("oc,bcn->bon", wq, x) + bq[None, :, None]        # (B, C8, N)
        k = jnp.einsum("oc,bcn->bon", wk, x) + bk[None, :, None]        # (B, C8, N)
    else:
        # Tiny C/8 would underfill the MXU contraction: fold Wq^T·Wk instead.
        # softmax(q^T k) == softmax(x^T W x + 1·(u^T x)) with W = Wq^T Wk,
        # u = Wk^T bq (row-constant terms cancel under the softmax).
        wqk = wq.T @ wk                                                  # (C, C)
        u = wk.T @ bq                                                    # (C,)
        k_main = jnp.einsum("oc,bcn->bon", wqk, x)                       # (B, C, N)
        k_bias = jnp.einsum("c,bcn->bn", u, x)[:, None, :]               # (B, 1, N)
        k = jnp.concatenate([k_main, k_bias], axis=1)                    # (B, C+1, N)
        q = jnp.concatenate([x, jnp.ones((B, 1, N), x.dtype)], axis=1)   # (B, C+1, N)

    v = jnp.einsum("oc,bcn->bon", wv, x) + bv[None, :, None]             # (B, C, N)
    # Ones row so row C of (v_aug @ p) is sum(p): l folded into the MXU matmul.
    v_aug = jnp.concatenate([v, jnp.ones((B, 1, N), v.dtype)], axis=1)   # (B, C+1, N)

    # Store the attention streams in the MXU compute dtype (halves HBM traffic
    # on the fast path, removes per-step casts).  Residual x stays f32.
    q = q.astype(compute_dtype)
    k = k.astype(compute_dtype)
    v_aug = v_aug.astype(compute_dtype)
    Kd = q.shape[1]

    t = _pick_tile(N) if tile is None else tile
    assert N % t == 0, "tile must divide H*W"
    tq = tk = t
    n_q, n_k = N // tq, N // tk

    kernel = functools.partial(sa_block_kernel, exp_dtype=exp_dtype,
                               approx_recip=approx_recip)

    out = pl.pallas_call(
        kernel,
        out_shape=jax.ShapeDtypeStruct((B, C, N), jnp.float32),
        grid_spec=pltpu.PrefetchScalarGridSpec(
            num_scalar_prefetch=0,
            grid=(B, n_q, n_k),
            in_specs=[
                pl.BlockSpec(memory_space=pltpu.MemorySpace.SMEM),           # gamma
                pl.BlockSpec((1, C, tq), lambda b, qi, ki: (b, 0, qi)),      # x (residual)
                pl.BlockSpec((1, Kd, tq), lambda b, qi, ki: (b, 0, qi)),     # q
                pl.BlockSpec((1, Kd, tk), lambda b, qi, ki: (b, 0, ki)),     # k
                pl.BlockSpec((1, C + 1, tk), lambda b, qi, ki: (b, 0, ki)),  # v + ones row
            ],
            out_specs=pl.BlockSpec((1, C, tq), lambda b, qi, ki: (b, 0, qi)),
            scratch_shapes=[
                pltpu.VMEM((1, tq), jnp.float32),        # running max
                pltpu.VMEM((C + 1, tq), jnp.float32),    # output acc (+ denom row)
            ],
        ),
        compiler_params=pltpu.CompilerParams(
            dimension_semantics=("parallel", "parallel", "arbitrary"),
            vmem_limit_bytes=vmem_limit_mb * 1024 * 1024,
        ),
    )(gamma, x, q, k, v_aug)

    return out.reshape(B, C, H, W)


def init_params(key, C):
    """Deterministic synthetic parameters matching SA_Block(in_dim=C).

    Weights stored in nn.Conv2d 1x1 layout (out_channels, in_channels)."""
    C8 = C // 8
    k1, k2, k3, k4, k5, k6 = jax.random.split(key, 6)
    scale = 0.1
    return {
        "wq": scale * jax.random.normal(k1, (C8, C), jnp.float32),
        "bq": scale * jax.random.normal(k2, (C8,), jnp.float32),
        "wk": scale * jax.random.normal(k3, (C8, C), jnp.float32),
        "bk": scale * jax.random.normal(k4, (C8,), jnp.float32),
        "wv": scale * jax.random.normal(k5, (C, C), jnp.float32),
        "bv": scale * jax.random.normal(k6, (C,), jnp.float32),
        "gamma": jnp.ones((1, 1), jnp.float32),   # nn.Parameter(torch.ones(1))
    }


def sa_block_reference(x_nchw, params):
    """Pure-JAX reference mirroring the PyTorch forward exactly."""
    B, C, H, W = x_nchw.shape
    N = H * W
    x = x_nchw.reshape(B, C, N)
    q = jnp.einsum("oc,bcn->bon", params["wq"], x) + params["bq"][None, :, None]
    k = jnp.einsum("oc,bcn->bon", params["wk"], x) + params["bk"][None, :, None]
    v = jnp.einsum("oc,bcn->bon", params["wv"], x) + params["bv"][None, :, None]
    energy = jnp.einsum("boi,boj->bij", q, k)            # (B, N, N)
    attn = jax.nn.softmax(energy, axis=-1)
    out = jnp.einsum("bcj,bij->bci", v, attn)            # (B, C, N)
    out = params["gamma"][0, 0] * out + x
    return out.reshape(B, C, H, W)


if __name__ == "__main__":
    B, C, H, W = 2, 32, 16, 16   # N = 256 (lane-dense), C // 8 = 4
    key = jax.random.PRNGKey(0)
    kx, kp = jax.random.split(key)
    x = jax.random.normal(kx, (B, C, H, W), jnp.float32)
    params = init_params(kp, C)

    ref = sa_block_reference(x, params)

    # Strict path, unfolded energy (exact contraction over C/8, exact recip).
    out_unfold = jax.block_until_ready(
        sa_block_forward(x, params, use_bf16_mxu=False, approx_recip=False,
                         fold_threshold=0))
    assert out_unfold.shape == (B, C, H, W)
    assert jnp.allclose(out_unfold, ref, atol=1e-4, rtol=1e-4), "f32 unfolded mismatch"

    # Strict path, folded energy (tiny C/8 branch taken by default threshold).
    out_fold = jax.block_until_ready(
        sa_block_forward(x, params, use_bf16_mxu=False, approx_recip=False))
    assert jnp.allclose(out_fold, ref, atol=1e-4, rtol=1e-4), "f32 folded mismatch"

    # Fast path: bf16 MXU operands + bf16 exp + approx reciprocal (v6e/v7x).
    out_fast = jax.block_until_ready(
        sa_block_forward(x, params, use_bf16_mxu=True, bf16_exp=True))
    assert jnp.allclose(out_fast, ref, atol=3e-2, rtol=3e-2), "bf16 path mismatch"

    print("KERNEL_OK")
</pallas_src>

<mosaic_0001>
module attributes {stable_mosaic.version = 11 : i64} {
  func.func @sa_block_kernel(%arg0: i32, %arg1: i32, %arg2: i32, %arg3: memref<1x1xf32, #tpu.memory_space<smem>>, %arg4: memref<1x32x256xf32, #tpu.memory_space<vmem>>, %arg5: memref<1x4x256xf32, #tpu.memory_space<vmem>>, %arg6: memref<1x4x256xf32, #tpu.memory_space<vmem>>, %arg7: memref<1x33x256xf32, #tpu.memory_space<vmem>>, %arg8: memref<1x32x256xf32, #tpu.memory_space<vmem>>, %arg9: memref<1x256xf32, #tpu.memory_space<vmem>>, %arg10: memref<33x256xf32, #tpu.memory_space<vmem>>) attributes {dimension_semantics = [#tpu.dimension_semantics<parallel>, #tpu.dimension_semantics<parallel>, #tpu.dimension_semantics<arbitrary>], iteration_bounds = array<i64: 2, 1, 1>, scalar_prefetch = 0 : i64, scratch_operands = 2 : i64, tpu.core_type = #tpu.core_type<tc>, window_params = [{transform_indices = @transform_0, window_bounds = array<i64: 1, 1>}, {transform_indices = @transform_1, window_bounds = array<i64: 1, 32, 256>}, {transform_indices = @transform_2, window_bounds = array<i64: 1, 4, 256>}, {transform_indices = @transform_3, window_bounds = array<i64: 1, 4, 256>}, {transform_indices = @transform_4, window_bounds = array<i64: 1, 33, 256>}, {transform_indices = @transform_5, window_bounds = array<i64: 1, 32, 256>}]} {
    %c0_i32 = arith.constant 0 : i32
    %0 = arith.cmpi eq, %arg2, %c0_i32 : i32
    %1 = arith.extui %0 : i1 to i32
    %c0_i32_0 = arith.constant 0 : i32
    %2 = arith.cmpi ne, %1, %c0_i32_0 : i32
    scf.if %2 {
      %cst_21 = arith.constant 0xFF800000 : f32
      %29 = vector.broadcast %cst_21 : f32 to vector<1x256xf32>
      %c0_22 = arith.constant 0 : index
      %c0_23 = arith.constant 0 : index
      %30 = vector.load %arg9[%c0_22, %c0_23] : memref<1x256xf32, #tpu.memory_space<vmem>>, vector<1x256xf32>
      tpu.vector_store %arg9[%c0_22, %c0_23], %29 {strides = array<i32>} : memref<1x256xf32, #tpu.memory_space<vmem>>, vector<1x256xf32>,
      %cst_24 = arith.constant 0.000000e+00 : f32
      %31 = vector.broadcast %cst_24 : f32 to vector<33x256xf32>
      %c0_25 = arith.constant 0 : index
      %c0_26 = arith.constant 0 : index
      %32 = vector.load %arg10[%c0_25, %c0_26] : memref<33x256xf32, #tpu.memory_space<vmem>>, vector<33x256xf32>
      tpu.vector_store %arg10[%c0_25, %c0_26], %31 {strides = array<i32>} : memref<33x256xf32, #tpu.memory_space<vmem>>, vector<33x256xf32>,
    } else {
    }
    %c0 = arith.constant 0 : index
    %c0_1 = arith.constant 0 : index
    %c0_2 = arith.constant 0 : index
    %3 = vector.load %arg5[%c0, %c0_1, %c0_2] : memref<1x4x256xf32, #tpu.memory_space<vmem>>, vector<1x4x256xf32>
    %4 = vector.shape_cast %3 : vector<1x4x256xf32> to vector<4x256xf32>
    %c0_3 = arith.constant 0 : index
    %c0_4 = arith.constant 0 : index
    %c0_5 = arith.constant 0 : index
    %5 = vector.load %arg6[%c0_3, %c0_4, %c0_5] : memref<1x4x256xf32, #tpu.memory_space<vmem>>, vector<1x4x256xf32>
    %6 = vector.shape_cast %5 : vector<1x4x256xf32> to vector<4x256xf32>
    %c0_6 = arith.constant 0 : index
    %c0_7 = arith.constant 0 : index
    %c0_8 = arith.constant 0 : index
    %7 = vector.load %arg7[%c0_6, %c0_7, %c0_8] : memref<1x33x256xf32, #tpu.memory_space<vmem>>, vector<1x33x256xf32>
    %8 = vector.shape_cast %7 : vector<1x33x256xf32> to vector<33x256xf32>
    %cst = arith.constant dense<0.000000e+00> : vector<256x256xf32>
    %9 = tpu.matmul %6, %4, %cst {dimension_numbers = #tpu.dot_dimension_numbers<[0], [0], [1], [1], [0, 1, 1, 1], [], []>} : vector<4x256xf32>, vector<4x256xf32>, vector<256x256xf32> -> vector<256x256xf32>
    %c0_9 = arith.constant 0 : index
    %c0_10 = arith.constant 0 : index
    %10 = vector.load %arg9[%c0_9, %c0_10] : memref<1x256xf32, #tpu.memory_space<vmem>>, vector<1x256xf32>
    %cst_11 = arith.constant dense<0xFF800000> : vector<256xf32>
    %11 = vector.multi_reduction <maximumf>, %9, %cst_11 [0] : vector<256x256xf32> to vector<256xf32>
    %12 = vector.shape_cast %11 : vector<256xf32> to vector<1x256xf32>
    %13 = arith.maximumf %10, %12 : vector<1x256xf32>
    %14 = arith.subf %10, %13 : vector<1x256xf32>
    %15 = math.exp %14 : vector<1x256xf32>
    %16 = vector.broadcast %13 : vector<1x256xf32> to vector<256x256xf32>
    %17 = arith.subf %9, %16 : vector<256x256xf32>
    %18 = math.exp %17 : vector<256x256xf32>
    %c0_12 = arith.constant 0 : index
    %c0_13 = arith.constant 0 : index
    %19 = vector.load %arg9[%c0_12, %c0_13] : memref<1x256xf32, #tpu.memory_space<vmem>>, vector<1x256xf32>
    tpu.vector_store %arg9[%c0_12, %c0_13], %13 {strides = array<i32>} : memref<1x256xf32, #tpu.memory_space<vmem>>, vector<1x256xf32>,
    %c0_14 = arith.constant 0 : index
    %c0_15 = arith.constant 0 : index
    %20 = vector.load %arg10[%c0_14, %c0_15] : memref<33x256xf32, #tpu.memory_space<vmem>>, vector<33x256xf32>
    %21 = vector.broadcast %15 : vector<1x256xf32> to vector<33x256xf32>
    %22 = arith.mulf %21, %20 : vector<33x256xf32>
    %cst_16 = arith.constant dense<0.000000e+00> : vector<33x256xf32>
    %23 = tpu.matmul %8, %18, %cst_16 {dimension_numbers = #tpu.dot_dimension_numbers<[1], [0], [0], [1], [0, 0, 1, 1], [], []>} : vector<33x256xf32>, vector<256x256xf32>, vector<33x256xf32> -> vector<33x256xf32>
    %24 = arith.addf %22, %23 : vector<33x256xf32>
    %c0_17 = arith.constant 0 : index
    %c0_18 = arith.constant 0 : index
    %25 = vector.load %arg10[%c0_17, %c0_18] : memref<33x256xf32, #tpu.memory_space<vmem>>, vector<33x256xf32>
    tpu.vector_store %arg10[%c0_17, %c0_18], %24 {strides = array<i32>} : memref<33x256xf32, #tpu.memory_space<vmem>>, vector<33x256xf32>,
    %c0_i32_19 = arith.constant 0 : i32
    %26 = arith.cmpi eq, %arg2, %c0_i32_19 : i32
    %27 = arith.extui %26 : i1 to i32
    %c0_i32_20 = arith.constant 0 : i32
    %28 = arith.cmpi ne, %27, %c0_i32_20 : i32
    scf.if %28 {
      %c32 = arith.constant 32 : index
      %c0_21 = arith.constant 0 : index
      %29 = vector.load %arg10[%c32, %c0_21] : memref<33x256xf32, #tpu.memory_space<vmem>>, vector<1x256xf32>
      %30 = tpu.reciprocal %29 : vector<1x256xf32> -> vector<1x256xf32>
      %c0_22 = arith.constant 0 : index
      %c0_23 = arith.constant 0 : index
      %31 = vector.load %arg10[%c0_22, %c0_23] : memref<33x256xf32, #tpu.memory_space<vmem>>, vector<32x256xf32>
      %32 = vector.broadcast %30 : vector<1x256xf32> to vector<32x256xf32>
      %33 = arith.mulf %31, %32 : vector<32x256xf32>
      %c0_24 = arith.constant 0 : index
      %c0_25 = arith.constant 0 : index
      %34 = memref.load %arg3[%c0_24, %c0_25] : memref<1x1xf32, #tpu.memory_space<smem>>
      %35 = vector.broadcast %34 : f32 to vector<32x256xf32>
      %36 = arith.mulf %35, %33 : vector<32x256xf32>
      %c0_26 = arith.constant 0 : index
      %c0_27 = arith.constant 0 : index
      %c0_28 = arith.constant 0 : index
      %37 = vector.load %arg4[%c0_26, %c0_27, %c0_28] : memref<1x32x256xf32, #tpu.memory_space<vmem>>, vector<1x32x256xf32>
      %38 = vector.shape_cast %37 : vector<1x32x256xf32> to vector<32x256xf32>
      %39 = arith.addf %36, %38 : vector<32x256xf32>
      %c0_29 = arith.constant 0 : index
      %c0_30 = arith.constant 0 : index
      %c0_31 = arith.constant 0 : index
      %40 = vector.load %arg8[%c0_29, %c0_30, %c0_31] : memref<1x32x256xf32, #tpu.memory_space<vmem>>, vector<1x32x256xf32>
      %41 = vector.shape_cast %40 : vector<1x32x256xf32> to vector<32x256xf32>
      %42 = vector.shape_cast %39 : vector<32x256xf32> to vector<1x32x256xf32>
      tpu.vector_store %arg8[%c0_29, %c0_30, %c0_31], %42 {strides = array<i32>} : memref<1x32x256xf32, #tpu.memory_space<vmem>>, vector<1x32x256xf32>,
    } else {
    }
    return
  }
  func.func @transform_0(%arg0: i32, %arg1: i32, %arg2: i32) -> (i32, i32) {
    %c0_i32 = arith.constant 0 : i32
    %c0_i32_0 = arith.constant 0 : i32
    %c0_i32_1 = arith.constant 0 : i32
    return %c0_i32, %c0_i32_0 : i32, i32
  }
  func.func @transform_1(%arg0: i32, %arg1: i32, %arg2: i32) -> (i32, i32, i32) {
    %c0_i32 = arith.constant 0 : i32
    %c0_i32_0 = arith.constant 0 : i32
    return %arg0, %c0_i32, %arg1 : i32, i32, i32
  }
  func.func @transform_2(%arg0: i32, %arg1: i32, %arg2: i32) -> (i32, i32, i32) {
    %c0_i32 = arith.constant 0 : i32
    %c0_i32_0 = arith.constant 0 : i32
    return %arg0, %c0_i32, %arg1 : i32, i32, i32
  }
  func.func @transform_3(%arg0: i32, %arg1: i32, %arg2: i32) -> (i32, i32, i32) {
    %c0_i32 = arith.constant 0 : i32
    %c0_i32_0 = arith.constant 0 : i32
    return %arg0, %c0_i32, %arg2 : i32, i32, i32
  }
  func.func @transform_4(%arg0: i32, %arg1: i32, %arg2: i32) -> (i32, i32, i32) {
    %c0_i32 = arith.constant 0 : i32
    %c0_i32_0 = arith.constant 0 : i32
    return %arg0, %c0_i32, %arg2 : i32, i32, i32
  }
  func.func @transform_5(%arg0: i32, %arg1: i32, %arg2: i32) -> (i32, i32, i32) {
    %c0_i32 = arith.constant 0 : i32
    %c0_i32_0 = arith.constant 0 : i32
    return %arg0, %c0_i32, %arg1 : i32, i32, i32
  }
}

</mosaic_0001>

<bundles_post_ra>
// kernel: sa_block_forward.1
= control target key start
LH: loop header
LB: loop body
LE: loop exit
PB: predicated region body
PF: predicated region fallthrough
CT: control target
= control target key end

     0   :  { %s1841_s20 = smov 0   ;;  %s1843_s21 = smov 0   ;;  %s2511_s0 = inlined_call_operand.<no memory space> [shape: f32[1,1], index: 0, kind: input, shape index: {}]   ;;  %s2512_s1 = inlined_call_operand.vmem [shape: f32[2,32,256], index: 1, kind: input, shape index: {}]   ;;  %s2513_s2 = inlined_call_operand.vmem [shape: f32[2,4,256], index: 2, kind: input, shape index: {}]   ;;  %s2514_s3 = inlined_call_operand.vmem [shape: f32[2,4,256], index: 3, kind: input, shape index: {}]   ;;  %s2515_s4 = inlined_call_operand.vmem [shape: f32[2,33,256], index: 4, kind: input, shape index: {}]   ;;  %s2516_s5 = inlined_call_operand.vmem [shape: f32[2,32,256], index: 5, kind: output, shape index: {}]  }
   0x1   :  { %10 = sst [smem:[#allocation4]] %s2511_s0  ;;  %s1845_s22 = smov 0  }
   0x2 LB: > { %s35_s0 = sadd.s32 1, %s1799_s21  ;;  %p1505_p0 = scmp.ge.s32.totalorder %s1803_s22, 1  ;;  %s1803_s22 = sphi %s1845_s22, %s16_s22   ;;  %s1799_s21 = sphi %s1843_s21, %s2712_s21   ;;  %s1795_s20 = sphi %s1841_s20, %s2711_s20  }
   0x3   : > { %p37_p1 = scmp.ge.s32.totalorder %s35_s0, 2  ;;  %p267_p2 = scmp.lt.s32.totalorder %s1803_s22, 3 }
   0x5   : > { %s2714_s0 = smov (%p37_p1, %s35_s0), 0  ;;  %p268_p3 = pnand %p1505_p0, %p267_p2 }
   0x7   : > { %271 = sbr.rel (%p268_p3) target bundleno = 859 (0x35b), region = 40 }
   0xe   : > { %p331_p4 = scmp.lt.s32.totalorder %s1795_s20, 1  ;;  %v1805_v0 = vmov 0.0   ;;  %vm577_vm0 = vcmask 1043456   ;;  %vm480_vm1 = vcmask 31744   ;;  %v2517_v44 = vlaneseq  ;;  %s1323_s9 = sld [smem:[#allocation4]] }
   0xf   : > { %646 = vmatprep.mubr.f32.mxu0 %v1805_v0  ;;  %397 = vst [vmem:[#allocation3 + $0x40] sm:$0x1] %v1805_v0  ;;  %398 = vst [vmem:[#allocation3 + $0x48] sm:$0x1] %v1805_v0  ;;  %v1806_v48 = vmov -inf  }
  0x10   : > { %s2716_s20 = smov (!%p331_p4, %s1795_s20), 1  ;;  %vm1951_vm2 = vcmp.lt.s32.totalorder %v2517_v44, 256 }
  0x11   : > { %s1552_s23 = sshll.u32 %s2716_s20, 3  ;;  %388 = vst.msk [vmem:[#allocation2] sm:$0x3] %vm1951_vm2, %v1806_v48  ;;  %s1619_s30 = smul.u32 80, %s2716_s20 }
  0x12   : > { %s358_s26 = scalar_lea.vmem %s2514_s3, %s1552_s23  ;;  %s348_s29 = scalar_lea.vmem %s2513_s2, %s1552_s23 }
  0x13   : > { %v400_v1 = vld [vmem:[%s358_s26] sm:$0xff]  ;;  %s2130_s8 = scalar_lea.vmem %s2515_s4, %s1619_s30  ;;  %s1551_s10 = sshll.u32 %s2716_s20, 6 }
  0x14   : > { %414 = vxpose.xlu0.b32.start.end [1/1] (short) %v400_v1, 128  ;;  %v399_v2 = vld [vmem:[%s348_s29] sm:$0xff]  ;;  %v412_v4 = vcombine.high %v400_v1, %v400_v1  ;;  %s338_s13 = scalar_lea.vmem %s2512_s1, %s1551_s10  ;;  %s378_s16 = scalar_lea.vmem %s2516_s5, %s1551_s10 }
  0x15   : > { %v479_v3 = vcombine.high %v399_v2, %v399_v2 }
  0x17   : > { %1515 = vmatprep.subr.msk.mxu0 %vm577_vm0, %v479_v3 }
  0x18   : > { %1516 = vmatpush1.msk.msra.mxu0 %vm577_vm0, %v399_v2 }
  0x51   : > { %446 = vxpose.xlu0.b32.start.end [1/1] (short) %v412_v4, 128 }
  0x94   : > { %v430_v5 = vpop.trf.xlu0 }
  0x95   : > { %1517 = vmatmul.mubr.msk.f32.vlgmr.msra.gmra.mrb[0].mxu0 %vm480_vm1, %v430_v5 }
  0x96   : > { %652 = vmatprep.mubr.f32.mxu0 %v1805_v0 }
  0x98   : > { %v431_v6 = vpop.trf.xlu0 }
  0x99   : > { %1518 = vmatmul.mubr.msk.f32.gmra.mrb[2].mxu0 %vm480_vm1, %v431_v6 }
  0x9a   : > { %658 = vmatprep.mubr.f32.mxu0 %v1805_v0 }
  0x9c   : > { %v432_v7 = vpop.trf.xlu0 }
  0x9d   : > { %1519 = vmatmul.mubr.msk.f32.gmra.mrb[4].mxu0 %vm480_vm1, %v432_v7 }
  0x9e   : > { %664 = vmatprep.mubr.f32.mxu0 %v1805_v0 }
  0xa0   : > { %v433_v8 = vpop.trf.xlu0 }
  0xa1   : > { %1520 = vmatmul.mubr.msk.f32.gmra.mrb[6].mxu0 %vm480_vm1, %v433_v8 }
  0xa2   : > { %670 = vmatprep.mubr.f32.mxu0 %v1805_v0 }
  0xa4   : > { %v434_v9 = vpop.trf.xlu0 }
  0xa5   : > { %1521 = vmatmul.mubr.msk.f32.gmra.mrb[8].mxu0 %vm480_vm1, %v434_v9 }
  0xa6   : > { %676 = vmatprep.mubr.f32.mxu0 %v1805_v0 }
  0xa8   : > { %v435_v10 = vpop.trf.xlu0 }
  0xa9   : > { %1522 = vmatmul.mubr.msk.f32.gmra.mrb[10].mxu0 %vm480_vm1, %v435_v10 }
  0xaa   : > { %682 = vmatprep.mubr.f32.mxu0 %v1805_v0 }
  0xac   : > { %v436_v11 = vpop.trf.xlu0 }
  0xad   : > { %1523 = vmatmul.mubr.msk.f32.gmra.mrb[12].mxu0 %vm480_vm1, %v436_v11 }
  0xae   : > { %688 = vmatprep.mubr.f32.mxu0 %v1805_v0 }
  0xb0   : > { %v437_v12 = vpop.trf.xlu0 }
  0xb1   : > { %1524 = vmatmul.mubr.msk.f32.gmra.mrb[14].mxu0 %vm480_vm1, %v437_v12 }
  0xb2   : > { %694 = vmatprep.mubr.f32.mxu0 %v1805_v0 }
  0xb4   : > { %v438_v13 = vpop.trf.xlu0 }
  0xb5   : > { %1525 = vmatmul.mubr.msk.f32.gmra.mrb[16].mxu0 %vm480_vm1, %v438_v13 }
  0xb6   : > { %700 = vmatprep.mubr.f32.mxu0 %v1805_v0 }
  0xb8   : > { %v439_v14 = vpop.trf.xlu0 }
  0xb9   : > { %1526 = vmatmul.mubr.msk.f32.gmra.mrb[18].mxu0 %vm480_vm1, %v439_v14 }
  0xba   : > { %706 = vmatprep.mubr.f32.mxu0 %v1805_v0 }
  0xbc   : > { %v440_v15 = vpop.trf.xlu0 }
  0xbd   : > { %1527 = vmatmul.mubr.msk.f32.gmra.mrb[20].mxu0 %vm480_vm1, %v440_v15 }
  0xbe   : > { %712 = vmatprep.mubr.f32.mxu0 %v1805_v0 }
  0xc0   : > { %v441_v16 = vpop.trf.xlu0 }
  0xc1   : > { %1528 = vmatmul.mubr.msk.f32.gmra.mrb[22].mxu0 %vm480_vm1, %v441_v16 }
  0xc2   : > { %718 = vmatprep.mubr.f32.mxu0 %v1805_v0 }
  0xc4   : > { %v442_v17 = vpop.trf.xlu0 }
  0xc5   : > { %1529 = vmatmul.mubr.msk.f32.gmra.mrb[24].mxu0 %vm480_vm1, %v442_v17 }
  0xc6   : > { %724 = vmatprep.mubr.f32.mxu0 %v1805_v0 }
  0xc8   : > { %v443_v18 = vpop.trf.xlu0 }
  0xc9   : > { %1530 = vmatmul.mubr.msk.f32.gmra.mrb[26].mxu0 %vm480_vm1, %v443_v18 }
  0xca   : > { %730 = vmatprep.mubr.f32.mxu0 %v1805_v0 }
  0xcc   : > { %v444_v19 = vpop.trf.xlu0 }
  0xcd   : > { %1531 = vmatmul.mubr.msk.f32.gmra.mrb[28].mxu0 %vm480_vm1, %v444_v19 }
  0xce   : > { %736 = vmatprep.mubr.f32.mxu0 %v1805_v0 }
  0xd0   : > { %v445_v20 = vpop.trf.xlu0 }
  0xd1   : > { %1532 = vmatmul.mubr.msk.f32.gmra.mrb[30].mxu0 %vm480_vm1, %v445_v20 }
  0xd2   : > { %742 = vmatprep.mubr.f32.mxu0 %v1805_v0 }
  0xd4   : > { %v462_v21 = vpop.trf.xlu0 }
  0xd5   : > { %1533 = vmatmul.mubr.msk.f32.gmra.mrb[32].mxu0 %vm480_vm1, %v462_v21 }
  0xd6   : > { %748 = vmatprep.mubr.f32.mxu0 %v1805_v0 }
  0xd8   : > { %v463_v22 = vpop.trf.xlu0 }
  0xd9   : > { %1534 = vmatmul.mubr.msk.f32.gmra.mrb[34].mxu0 %vm480_vm1, %v463_v22 }
  0xda   : > { %754 = vmatprep.mubr.f32.mxu0 %v1805_v0 }
  0xdc   : > { %v464_v23 = vpop.trf.xlu0 }
  0xdd   : > { %1535 = vmatmul.mubr.msk.f32.gmra.mrb[36].mxu0 %vm480_vm1, %v464_v23 }
  0xde   : > { %760 = vmatprep.mubr.f32.mxu0 %v1805_v0 }
  0xe0   : > { %v465_v24 = vpop.trf.xlu0 }
  0xe1   : > { %1536 = vmatmul.mubr.msk.f32.gmra.mrb[38].mxu0 %vm480_vm1, %v465_v24 }
  0xe2   : > { %766 = vmatprep.mubr.f32.mxu0 %v1805_v0 }
  0xe4   : > { %v466_v25 = vpop.trf.xlu0 }
  0xe5   : > { %1537 = vmatmul.mubr.msk.f32.gmra.mrb[40].mxu0 %vm480_vm1, %v466_v25 }
  0xe6   : > { %772 = vmatprep.mubr.f32.mxu0 %v1805_v0 }
  0xe8   : > { %v467_v26 = vpop.trf.xlu0 }
  0xe9   : > { %1538 = vmatmul.mubr.msk.f32.gmra.mrb[42].mxu0 %vm480_vm1, %v467_v26 }
  0xea   : > { %778 = vmatprep.mubr.f32.mxu0 %v1805_v0 }
  0xec   : > { %v468_v27 = vpop.trf.xlu0 }
  0xed   : > { %1539 = vmatmul.mubr.msk.f32.gmra.mrb[44].mxu0 %vm480_vm1, %v468_v27 }
  0xee   : > { %784 = vmatprep.mubr.f32.mxu0 %v1805_v0 }
  0xf0   : > { %v469_v28 = vpop.trf.xlu0 }
  0xf1   : > { %1540 = vmatmul.mubr.msk.f32.gmra.mrb[46].mxu0 %vm480_vm1, %v469_v28 }
  0xf2   : > { %790 = vmatprep.mubr.f32.mxu0 %v1805_v0 }
  0xf4   : > { %v470_v29 = vpop.trf.xlu0 }
  0xf5   : > { %1541 = vmatmul.mubr.msk.f32.gmra.mrb[48].mxu0 %vm480_vm1, %v470_v29 }
  0xf6   : > { %796 = vmatprep.mubr.f32.mxu0 %v1805_v0 }
  0xf8   : > { %v471_v30 = vpop.trf.xlu0 }
  0xf9   : > { %1542 = vmatmul.mubr.msk.f32.gmra.mrb[50].mxu0 %vm480_vm1, %v471_v30 }
  0xfa   : > { %802 = vmatprep.mubr.f32.mxu0 %v1805_v0 }
  0xfc   : > { %v472_v31 = vpop.trf.xlu0 }
  0xfd   : > { %1543 = vmatmul.mubr.msk.f32.gmra.mrb[52].mxu0 %vm480_vm1, %v472_v31 }
  0xfe   : > { %808 = vmatprep.mubr.f32.mxu0 %v1805_v0 }
 0x100   : > { %v473_v32 = vpop.trf.xlu0 }
 0x101   : > { %1544 = vmatmul.mubr.msk.f32.gmra.mrb[54].mxu0 %vm480_vm1, %v473_v32 }
 0x102   : > { %814 = vmatprep.mubr.f32.mxu0 %v1805_v0 }
 0x104   : > { %v474_v33 = vpop.trf.xlu0 }
 0x105   : > { %1545 = vmatmul.mubr.msk.f32.gmra.mrb[56].mxu0 %vm480_vm1, %v474_v33 }
 0x106   : > { %820 = vmatprep.mubr.f32.mxu0 %v1805_v0 }
 0x108   : > { %v475_v34 = vpop.trf.xlu0 }
 0x109   : > { %1546 = vmatmul.mubr.msk.f32.gmra.mrb[58].mxu0 %vm480_vm1, %v475_v34 }
 0x10a   : > { %826 = vmatprep.mubr.f32.mxu0 %v1805_v0 }
 0x10c   : > { %v476_v35 = vpop.trf.xlu0 }
 0x10d   : > { %1547 = vmatmul.mubr.msk.f32.gmra.mrb[60].mxu0 %vm480_vm1, %v476_v35 }
 0x10e   : > { %832 = vmatprep.mubr.f32.mxu0 %v1805_v0 }
 0x110   : > { %v477_v36 = vpop.trf.xlu0 }
 0x111   : > { %1548 = vmatmul.mubr.msk.f32.gmra.mrb[62].mxu0 %vm480_vm1, %v477_v36 }
 0x168   : > { %v1934_v37 = vpop.f32.mrb[0].mxu0 }
 0x169   : > { %v1936_v38 = vpop.f32.mrb[1].mxu0 }
 0x16c   : > { %v1938_v39 = vpop.f32.mrb[2].mxu0 }
 0x16d   : > { %v1940_v40 = vpop.f32.mrb[3].mxu0 }
 0x170   : > { %v1942_v41 = vpop.f32.mrb[4].mxu0 }
 0x171   : > { %v840_v42 = vmax.f32 %v1934_v37, %v1942_v41  ;;  %v1946_v43 = vpop.f32.mrb[5].mxu0 }
 0x172   : > { %v877_v45 = vmax.f32 %v1936_v38, %v1946_v43 }
 0x174   : > { %v1955_v47 = vpop.f32.mrb[6].mxu0 }
 0x175   : > { %v841_v49 = vmax.f32 %v1938_v39, %v1955_v47  ;;  %v1961_v50 = vpop.f32.mrb[7].mxu0 }
 0x176   : > { %v878_v51 = vmax.f32 %v1940_v40, %v1961_v50 }
 0x178   : > { %v1965_v52 = vpop.f32.mrb[8].mxu0 }
 0x179   : > { %v842_v53 = vmax.f32 %v840_v42, %v1965_v52  ;;  %v1968_v54 = vpop.f32.mrb[9].mxu0 }
 0x17a   : > { %v879_v55 = vmax.f32 %v877_v45, %v1968_v54 }
 0x17c   : > { %v1971_v56 = vpop.f32.mrb[10].mxu0 }
 0x17d   : > { %v843_v57 = vmax.f32 %v841_v49, %v1971_v56  ;;  %v1974_v58 = vpop.f32.mrb[11].mxu0 }
 0x17e   : > { %v880_v59 = vmax.f32 %v878_v51, %v1974_v58 }
 0x180   : > { %v1977_v60 = vpop.f32.mrb[12].mxu0 }
 0x181   : > { %v844_v61 = vmax.f32 %v842_v53, %v1977_v60  ;;  %v1980_v62 = vpop.f32.mrb[13].mxu0 }
 0x182   : > { %v881_v63 = vmax.f32 %v879_v55, %v1980_v62 }
 0x184   : > { %v1983_v0 = vpop.f32.mrb[14].mxu0 }
 0x185   : > { %v845_v1 = vmax.f32 %v843_v57, %v1983_v0  ;;  %v1986_v2 = vpop.f32.mrb[15].mxu0 }
 0x186   : > { %v882_v3 = vmax.f32 %v880_v59, %v1986_v2 }
 0x188   : > { %v1989_v4 = vpop.f32.mrb[16].mxu0 }
 0x189   : > { %v846_v5 = vmax.f32 %v844_v61, %v1989_v4  ;;  %v1992_v6 = vpop.f32.mrb[17].mxu0 }
 0x18a   : > { %v883_v7 = vmax.f32 %v881_v63, %v1992_v6 }
 0x18c   : > { %v1995_v8 = vpop.f32.mrb[18].mxu0 }
 0x18d   : > { %v847_v9 = vmax.f32 %v845_v1, %v1995_v8  ;;  %v1998_v10 = vpop.f32.mrb[19].mxu0 }
 0x18e   : > { %v884_v11 = vmax.f32 %v882_v3, %v1998_v10 }
 0x190   : > { %v2001_v12 = vpop.f32.mrb[20].mxu0 }
 0x191   : > { %v848_v13 = vmax.f32 %v846_v5, %v2001_v12  ;;  %v2004_v14 = vpop.f32.mrb[21].mxu0 }
 0x192   : > { %v885_v15 = vmax.f32 %v883_v7, %v2004_v14 }
 0x194   : > { %v2007_v16 = vpop.f32.mrb[22].mxu0 }
 0x195   : > { %v849_v17 = vmax.f32 %v847_v9, %v2007_v16  ;;  %v2010_v18 = vpop.f32.mrb[23].mxu0 }
 0x196   : > { %v886_v19 = vmax.f32 %v884_v11, %v2010_v18 }
 0x198   : > { %v2013_v20 = vpop.f32.mrb[24].mxu0 }
 0x199   : > { %v850_v21 = vmax.f32 %v848_v13, %v2013_v20  ;;  %v2016_v22 = vpop.f32.mrb[25].mxu0 }
 0x19a   : > { %v887_v23 = vmax.f32 %v885_v15, %v2016_v22 }
 0x19c   : > { %v2019_v24 = vpop.f32.mrb[26].mxu0 }
 0x19d   : > { %v851_v25 = vmax.f32 %v849_v17, %v2019_v24  ;;  %v2022_v26 = vpop.f32.mrb[27].mxu0 }
 0x19e   : > { %v888_v27 = vmax.f32 %v886_v19, %v2022_v26 }
 0x1a0   : > { %v2025_v28 = vpop.f32.mrb[28].mxu0 }
 0x1a1   : > { %v852_v29 = vmax.f32 %v850_v21, %v2025_v28  ;;  %v2028_v30 = vpop.f32.mrb[29].mxu0 }
 0x1a2   : > { %v889_v31 = vmax.f32 %v887_v23, %v2028_v30 }
 0x1a4   : > { %v2031_v32 = vpop.f32.mrb[30].mxu0 }
 0x1a5   : > { %v853_v33 = vmax.f32 %v851_v25, %v2031_v32  ;;  %v2034_v34 = vpop.f32.mrb[31].mxu0 }
 0x1a6   : > { %v890_v35 = vmax.f32 %v888_v27, %v2034_v34 }
 0x1a8   : > { %v2037_v36 = vpop.f32.mrb[32].mxu0 }
 0x1a9   : > { %v854_v42 = vmax.f32 %v852_v29, %v2037_v36  ;;  %v2040_v45 = vpop.f32.mrb[33].mxu0 }
 0x1aa   : > { %v891_v48 = vmax.f32 %v889_v31, %v2040_v45 }
 0x1ac   : > { %v2043_v49 = vpop.f32.mrb[34].mxu0 }
 0x1ad   : > { %v855_v51 = vmax.f32 %v853_v33, %v2043_v49  ;;  %v2046_v53 = vpop.f32.mrb[35].mxu0 }
 0x1ae   : > { %v892_v55 = vmax.f32 %v890_v35, %v2046_v53 }
 0x1b0   : > { %v2049_v57 = vpop.f32.mrb[36].mxu0 }
 0x1b1   : > { %v856_v59 = vmax.f32 %v854_v42, %v2049_v57  ;;  %v2052_v61 = vpop.f32.mrb[37].mxu0 }
 0x1b2   : > { %v893_v63 = vmax.f32 %v891_v48, %v2052_v61 }
 0x1b4   : > { %v2055_v1 = vpop.f32.mrb[38].mxu0 }
 0x1b5   : > { %2576 = vst [vmem:[#allocation5_spill] sm:$0xff] %v2055_v1  ;;  %v857_v3 = vmax.f32 %v855_v51, %v2055_v1  ;;  %v2058_v5 = vpop.f32.mrb[39].mxu0 }
 0x1b6   : > { %2577 = vst [vmem:[#allocation6_spill] sm:$0xff] %v2058_v5  ;;  %v894_v7 = vmax.f32 %v892_v55, %v2058_v5 }
 0x1b8   : > { %v2061_v9 = vpop.f32.mrb[40].mxu0 }
 0x1b9   : > { %2578 = vst [vmem:[#allocation7_spill] sm:$0xff] %v2061_v9  ;;  %v858_v11 = vmax.f32 %v856_v59, %v2061_v9  ;;  %v2064_v13 = vpop.f32.mrb[41].mxu0  ;;  %v2601_v9 = vlaneseq }
 0x1ba   : > { %2579 = vst [vmem:[#allocation8_spill] sm:$0xff] %v2064_v13  ;;  %v895_v15 = vmax.f32 %v893_v63, %v2064_v13 }
 0x1bb   : > { %v921_v5 = vshrl.u32 %v2601_v9, 7 }
 0x1bc   : > { %v2067_v17 = vpop.f32.mrb[42].mxu0  ;;  %v2606_v9 = vld [vmem:[#allocation5_spill] sm:$0xff] }
 0x1bd   : > { %2580 = vst [vmem:[#allocation9_spill] sm:$0xff] %v2067_v17  ;;  %v859_v19 = vmax.f32 %v857_v3, %v2067_v17  ;;  %v2070_v21 = vpop.f32.mrb[43].mxu0 }
 0x1be   : > { %2581 = vst [vmem:[#allocation10_spill] sm:$0xff] %v2070_v21  ;;  %v896_v23 = vmax.f32 %v894_v7, %v2070_v21 }
 0x1c0   : > { %v2073_v25 = vpop.f32.mrb[44].mxu0 }
 0x1c1   : > { %2582 = vst [vmem:[#allocation11_spill] sm:$0xff] %v2073_v25  ;;  %v860_v27 = vmax.f32 %v858_v11, %v2073_v25  ;;  %v2076_v29 = vpop.f32.mrb[45].mxu0 }
 0x1c2   : > { %2583 = vst [vmem:[#allocation12_spill] sm:$0xff] %v2076_v29  ;;  %v897_v31 = vmax.f32 %v895_v15, %v2076_v29  ;;  %v1807_v29 = vmov 1966171168  }
 0x1c3   : > { %v918_v25 = vunpack.c.l.s4 %v1807_v29  ;;  %v2142_v29 = vsub.s32 1, %v921_v5 }
 0x1c4   : > { %v2079_v33 = vpop.f32.mrb[46].mxu0 }
 0x1c5   : > { %2584 = vst [vmem:[#allocation13_spill] sm:$0xff] %v2079_v33  ;;  %v861_v35 = vmax.f32 %v859_v19, %v2079_v33  ;;  %v2082_v42 = vpop.f32.mrb[47].mxu0  ;;  %2604 = vst [vmem:[#allocation32_spill] sm:$0xff] %v2142_v29 }
 0x1c6   : > { %2585 = vst [vmem:[#allocation14_spill] sm:$0xff] %v2082_v42  ;;  %v898_v48 = vmax.f32 %v896_v23, %v2082_v42 }
 0x1c8   : > { %v2085_v51 = vpop.f32.mrb[48].mxu0 }
 0x1c9   : > { %2586 = vst [vmem:[#allocation15_spill] sm:$0xff] %v2085_v51  ;;  %v862_v55 = vmax.f32 %v860_v27, %v2085_v51  ;;  %v2088_v59 = vpop.f32.mrb[49].mxu0 }
 0x1ca   : > { %2587 = vst [vmem:[#allocation16_spill] sm:$0xff] %v2088_v59  ;;  %v899_v63 = vmax.f32 %v897_v31, %v2088_v59 }
 0x1cc   : > { %v2091_v3 = vpop.f32.mrb[50].mxu0 }
 0x1cd   : > { %2588 = vst [vmem:[#allocation17_spill] sm:$0xff] %v2091_v3  ;;  %v863_v7 = vmax.f32 %v861_v35, %v2091_v3  ;;  %v2094_v11 = vpop.f32.mrb[51].mxu0 }
 0x1ce   : > { %2589 = vst [vmem:[#allocation18_spill] sm:$0xff] %v2094_v11  ;;  %v900_v15 = vmax.f32 %v898_v48, %v2094_v11 }
 0x1d0   : > { %v2097_v19 = vpop.f32.mrb[52].mxu0 }
 0x1d1   : > { %2590 = vst [vmem:[#allocation19_spill] sm:$0xff] %v2097_v19  ;;  %v864_v23 = vmax.f32 %v862_v55, %v2097_v19  ;;  %v2100_v44 = vpop.f32.mrb[53].mxu0 }
 0x1d2   : > { %2591 = vst [vmem:[#allocation20_spill] sm:$0xff] %v2100_v44  ;;  %v901_v27 = vmax.f32 %v899_v63, %v2100_v44 }
 0x1d4   : > { %v2103_v51 = vpop.f32.mrb[54].mxu0 }
 0x1d5   : > { %2592 = vst [vmem:[#allocation21_spill] sm:$0xff] %v2103_v51  ;;  %v865_v31 = vmax.f32 %v863_v7, %v2103_v51  ;;  %v2106_v59 = vpop.f32.mrb[55].mxu0 }
 0x1d6   : > { %2593 = vst [vmem:[#allocation22_spill] sm:$0xff] %v2106_v59  ;;  %v902_v35 = vmax.f32 %v900_v15, %v2106_v59 }
 0x1d8   : > { %v2109_v3 = vpop.f32.mrb[56].mxu0 }
 0x1d9   : > { %2594 = vst [vmem:[#allocation23_spill] sm:$0xff] %v2109_v3  ;;  %v866_v48 = vmax.f32 %v864_v23, %v2109_v3  ;;  %v2112_v11 = vpop.f32.mrb[57].mxu0 }
 0x1da   : > { %2595 = vst [vmem:[#allocation24_spill] sm:$0xff] %v2112_v11  ;;  %v903_v55 = vmax.f32 %v901_v27, %v2112_v11 }
 0x1dc   : > { %v2115_v19 = vpop.f32.mrb[58].mxu0 }
 0x1dd   : > { %2596 = vst [vmem:[#allocation25_spill] sm:$0xff] %v2115_v19  ;;  %v867_v63 = vmax.f32 %v865_v31, %v2115_v19  ;;  %v2118_v44 = vpop.f32.mrb[59].mxu0 }
 0x1de   : > { %2597 = vst [vmem:[#allocation26_spill] sm:$0xff] %v2118_v44  ;;  %v904_v7 = vmax.f32 %v902_v35, %v2118_v44  ;;  %v402_v35 = vld [vmem:[%s2130_s8 + $0x8] sm:$0xff] }
 0x1df   : > { %1239 = vmatprep.mubr.f32.mxu1 %v402_v35 }
 0x1e0   : > { %v2122_v51 = vpop.f32.mrb[60].mxu0 }
 0x1e1   : > { %2598 = vst [vmem:[#allocation27_spill] sm:$0xff] %v2122_v51  ;;  %v868_v15 = vmax.f32 %v866_v48, %v2122_v51  ;;  %v2125_v59 = vpop.f32.mrb[61].mxu0 }
 0x1e2   : > { %2599 = vst [vmem:[#allocation28_spill] sm:$0xff] %v2125_v59  ;;  %v905_v23 = vmax.f32 %v903_v55, %v2125_v59  ;;  %v919_v59 = vunpack.c.0.s8 %v918_v25 }
 0x1e4   : > { %v2133_v27 = vpop.f32.mrb[62].mxu0  ;;  %v922_v35 = vsub.s32 %v919_v59, %v921_v5 }
 0x1e5   : > { %2600 = vst [vmem:[#allocation29_spill] sm:$0xff] %v2133_v27  ;;  %v869_v31 = vmax.f32 %v867_v63, %v2133_v27  ;;  %v836_v19 = vpop.f32.mrb[63].mxu0 }
 0x1e6   : > { %v906_v44 = vmax.f32 %v904_v7, %v836_v19 }
 0x1e7   : > { %v870_v11 = vmax.f32 %v868_v15, %v869_v31 }
 0x1e8   : > { %v907_v48 = vmax.f32 %v905_v23, %v906_v44  ;;  %v2138_v23 = vld [vmem:[#allocation2] sm:$0x3] }
 0x1e9   : > { %v871_v51 = vrot.slane %v870_v11, 4  ;;  %2602 = vst [vmem:[#allocation30_spill] sm:$0xff] %v2138_v23  ;;  %v2629_v31 = vld [vmem:[#allocation28_spill] sm:$0xff] }
 0x1ea   : > { %v908_v3 = vrot.slane %v907_v48, 4 }
 0x1eb   : > { %v872_v42 = vmax.f32 %v870_v11, %v871_v51 }
 0x1ec   : > { %v909_v33 = vmax.f32 %v907_v48, %v908_v3  ;;  %v2140_v3 = vsub.s32 0, %v921_v5  ;;  %v2614_v48 = vld [vmem:[#allocation13_spill] sm:$0xff] }
 0x1ed   : > { %v873_v21 = vrot.slane %v872_v42, 2 }
 0x1ee   : > { %v910_v17 = vrot.slane %v909_v33, 2  ;;  %2603 = vst [vmem:[#allocation31_spill] sm:$0xff] %v2140_v3 }
 0x1ef   : > { %v874_v13 = vmax.f32 %v872_v42, %v873_v21 }
 0x1f0   : > { %v911_v55 = vmax.f32 %v909_v33, %v910_v17 }
 0x1f1   : > { %v875_v63 = vrot.slane %v874_v13, 1 }
 0x1f2   : > { %v912_v27 = vrot.slane %v911_v55, 1 }
 0x1f3   : > { %v876_v1 = vmax.f32 %v874_v13, %v875_v63 }
 0x1f4   : > { %v913_v7 = vmax.f32 %v911_v55, %v912_v27  ;;  %v2613_v55 = vld [vmem:[#allocation12_spill] sm:$0xff] }
 0x1f6   : > { %v916_v15 = vcombine.low %v876_v1, %v913_v7  ;;  %v2608_v7 = vld [vmem:[#allocation7_spill] sm:$0xff] }
 0x1f8   : > { %v923_v44 = vrot.slane %v916_v15, %v922_v35  ;;  %v2610_v15 = vld [vmem:[#allocation9_spill] sm:$0xff] }
 0x1fa   : > { %v930_v51 = vrot.slane %v923_v44, %v922_v35  ;;  %v2609_v35 = vld [vmem:[#allocation8_spill] sm:$0xff]  ;;  %v2611_v44 = vld [vmem:[#allocation10_spill] sm:$0xff] }
 0x1fc   : > { %v2145_v21 = vmax.f32 %v2138_v23, %v930_v51  ;;  %v2612_v51 = vld [vmem:[#allocation11_spill] sm:$0xff] }
 0x1fd   : > { %v2628_v23 = vld [vmem:[#allocation27_spill] sm:$0xff] }
 0x1fe   : > { %2605 = vst [vmem:[#allocation33_spill] sm:$0xff] %v2145_v21  ;;  %v2151_v13 = vrot.slane %v2145_v21, %v2140_v3  ;;  %v2155_v1 = vrot.slane %v2145_v21, %v2142_v29  ;;  %1143 = vst.msk [vmem:[#allocation2] sm:$0x3] %vm1951_vm2, %v2145_v21  ;;  %v2625_v29 = vld [vmem:[#allocation24_spill] sm:$0xff]  ;;  %v2626_v3 = vld [vmem:[#allocation25_spill] sm:$0xff] }
 0x200   : > { %v1010_v5 = vsub.f32 %v836_v19, %v2155_v1  ;;  %v2631_v19 = vsub.f32 %v1934_v37, %v2151_v13  ;;  %v2632_v11 = vsub.f32 %v1936_v38, %v2155_v1  ;;  %v2633_v59 = vsub.f32 %v1938_v39, %v2151_v13 }
 0x201   : > { %v2634_v42 = vsub.f32 %v1940_v40, %v2155_v1  ;;  %v2635_v25 = vsub.f32 %v1942_v41, %v2151_v13  ;;  %v2636_v37 = vsub.f32 %v1946_v43, %v2155_v1  ;;  %v2637_v39 = vsub.f32 %v1955_v47, %v2151_v13 }
 0x202   : > { %v1137_v63 = vmul.f32 1.442695, %v1010_v5  ;;  %v2607_v5 = vld [vmem:[#allocation6_spill] sm:$0xff]  ;;  %v1011_v17 = vmul.f32 1.442695, %v2631_v19  ;;  %v2638_v40 = vsub.f32 %v1961_v50, %v2155_v1  ;;  %v2639_v41 = vsub.f32 %v1965_v52, %v2151_v13 }
 0x203   : > { %v1013_v46 = vmul.f32 1.442695, %v2632_v11  ;;  %v1015_v21 = vmul.f32 1.442695, %v2633_v59  ;;  %v1017_v33 = vmul.f32 1.442695, %v2634_v42  ;;  %v2640_v43 = vsub.f32 %v1968_v54, %v2155_v1 }
 0x204   : > { %1649 = vpow2.f32 %v1137_v63  ;;  %v1019_v27 = vmul.f32 1.442695, %v2635_v25  ;;  %v1021_v38 = vmul.f32 1.442695, %v2636_v37  ;;  %v1023_v59 = vmul.f32 1.442695, %v2637_v39 }
 0x205   : > { %1651 = vpow2.f32 %v1011_v17  ;;  %v1025_v42 = vmul.f32 1.442695, %v2638_v40  ;;  %v1027_v17 = vmul.f32 1.442695, %v2639_v41  ;;  %v1029_v25 = vmul.f32 1.442695, %v2640_v43 }
 0x206   : > { %1653 = vpow2.f32 %v1013_v46  ;;  %v2641_v47 = vsub.f32 %v1971_v56, %v2151_v13  ;;  %v2642_v50 = vsub.f32 %v1974_v58, %v2155_v1  ;;  %v2643_v52 = vsub.f32 %v1977_v60, %v2151_v13 }
 0x207   : > { %1655 = vpow2.f32 %v1015_v21  ;;  %v2644_v54 = vsub.f32 %v1980_v62, %v2155_v1  ;;  %v2645_v56 = vsub.f32 %v1983_v0, %v2151_v13  ;;  %v2646_v37 = vsub.f32 %v1986_v2, %v2155_v1 }
 0x208   : > { %1657 = vpow2.f32 %v1017_v33  ;;  %v1031_v21 = vmul.f32 1.442695, %v2641_v47  ;;  %v1033_v33 = vmul.f32 1.442695, %v2642_v50  ;;  %v1035_v46 = vmul.f32 1.442695, %v2643_v52 }
 0x209   : > { %1659 = vpow2.f32 %v1019_v27  ;;  %v1037_v19 = vmul.f32 1.442695, %v2644_v54  ;;  %v1039_v63 = vmul.f32 1.442695, %v2645_v56  ;;  %v1041_v60 = vmul.f32 1.442695, %v2646_v37 }
 0x20a   : > { %1661 = vpow2.f32 %v1021_v38  ;;  %v2647_v39 = vsub.f32 %v1989_v4, %v2151_v13  ;;  %v2648_v40 = vsub.f32 %v1992_v6, %v2155_v1  ;;  %v2649_v41 = vsub.f32 %v1995_v8, %v2151_v13 }
 0x20b   : > { %1663 = vpow2.f32 %v1023_v59  ;;  %v2650_v43 = vsub.f32 %v1998_v10, %v2155_v1  ;;  %v2651_v47 = vsub.f32 %v2001_v12, %v2151_v13  ;;  %v2652_v50 = vsub.f32 %v2004_v14, %v2155_v1 }
 0x20c   : > { %1665 = vpow2.f32 %v1025_v42  ;;  %v1043_v59 = vmul.f32 1.442695, %v2647_v39  ;;  %v1045_v42 = vmul.f32 1.442695, %v2648_v40  ;;  %v2653_v52 = vsub.f32 %v2007_v16, %v2151_v13 }
 0x20d   : > { %1667 = vpow2.f32 %v1027_v17  ;;  %v1047_v17 = vmul.f32 1.442695, %v2649_v41  ;;  %v2654_v10 = vsub.f32 %v2010_v18, %v2155_v1  ;;  %v2655_v14 = vsub.f32 %v2013_v20, %v2151_v13 }
 0x20e   : > { %v2326_v11 = vpop.eup %1649  ;;  %1669 = vpow2.f32 %v1029_v25  ;;  %v1049_v25 = vmul.f32 1.442695, %v2650_v43  ;;  %v2656_v16 = vsub.f32 %v2016_v22, %v2155_v1  ;;  %v2658_v20 = vsub.f32 %v2022_v26, %v2155_v1 }
 0x20f   : > { %v1652_v27 = vpop.eup %1651  ;;  %1671 = vpow2.f32 %v1031_v21  ;;  %v1051_v21 = vmul.f32 1.442695, %v2651_v47  ;;  %v1057_v54 = vmul.f32 1.442695, %v2654_v10  ;;  %v2659_v22 = vsub.f32 %v2025_v28, %v2151_v13 }
 0x210   : > { %v1654_v58 = vpop.eup %1653  ;;  %1673 = vpow2.f32 %v1033_v33  ;;  %v1053_v33 = vmul.f32 1.442695, %v2652_v50  ;;  %v1061_v40 = vmul.f32 1.442695, %v2656_v16  ;;  %v2661_v26 = vsub.f32 %v2031_v32, %v2151_v13 }
 0x211   : > { %v1656_v38 = vpop.eup %1655  ;;  %1675 = vpow2.f32 %v1035_v46  ;;  %v1055_v46 = vmul.f32 1.442695, %v2653_v52  ;;  %v2662_v28 = vsub.f32 %v2034_v34, %v2155_v1  ;;  %v2664_v32 = vsub.f32 %v2040_v45, %v2155_v1 }
 0x212   : > { %v1658_v62 = vpop.eup %1657  ;;  %1677 = vpow2.f32 %v1037_v19  ;;  %v1557_v56 = vpack.c.bf16 %v1656_v38, %v1652_v27  ;;  %v2657_v27 = vsub.f32 %v2019_v24, %v2151_v13  ;;  %v2660_v24 = vsub.f32 %v2028_v30, %v2155_v1 }
 0x213   : > { %v1660_v0 = vpop.eup %1659  ;;  %1679 = vpow2.f32 %v1039_v63  ;;  %v1555_v12 = vpack.c.bf16 %v1658_v62, %v1654_v58  ;;  %v1071_v47 = vmul.f32 1.442695, %v2661_v26  ;;  %v1073_v50 = vmul.f32 1.442695, %v2662_v28 }
 0x214   : > { %v1662_v2 = vpop.eup %1661  ;;  %1681 = vpow2.f32 %v1041_v60  ;;  %v1059_v60 = vmul.f32 1.442695, %v2655_v14  ;;  %v1063_v58 = vmul.f32 1.442695, %v2657_v27  ;;  %v1069_v43 = vmul.f32 1.442695, %v2660_v24 }
 0x215   : > { %v1664_v4 = vpop.eup %1663  ;;  %1683 = vpow2.f32 %v1043_v59  ;;  %1556 = vmatprep.subr.bf16.mxu1 %v1555_v12  ;;  %v2663_v30 = vsub.f32 %v2037_v36, %v2151_v13  ;;  %v2665_v34 = vsub.f32 %v2043_v49, %v2151_v13  ;;  %v2666_v36 = vsub.f32 %v2046_v53, %v2155_v1 }
 0x216   : > { %v1666_v6 = vpop.eup %1665  ;;  %1685 = vpow2.f32 %v1045_v42  ;;  %v1561_v39 = vpack.c.bf16 %v1664_v4, %v1660_v0  ;;  %1558 = vmatpush1.bf16.msra.mxu1 %v1557_v56  ;;  %v1065_v0 = vmul.f32 1.442695, %v2658_v20  ;;  %v2667_v45 = vsub.f32 %v2049_v57, %v2151_v13 }
 0x217   : > { %v1668_v8 = vpop.eup %1667  ;;  %1687 = vpow2.f32 %v1047_v17  ;;  %v1559_v63 = vpack.c.bf16 %v1666_v6, %v1662_v2  ;;  %v1067_v17 = vmul.f32 1.442695, %v2659_v22  ;;  %v2668_v49 = vsub.f32 %v2052_v61, %v2155_v1 }
 0x218   : > { %v1670_v19 = vpop.eup %1669  ;;  %1689 = vpow2.f32 %v1049_v25  ;;  %v1083_v14 = vmul.f32 1.442695, %v2667_v45  ;;  %v2669_v53 = vsub.f32 %v2606_v9, %v2151_v13  ;;  %v2670_v57 = vsub.f32 %v2607_v5, %v2155_v1  ;;  %v2686_v45 = vld [vmem:[#allocation18_spill] sm:$0xff] }
 0x219   : > { %v1672_v37 = vpop.eup %1671  ;;  %1691 = vpow2.f32 %v1051_v21  ;;  %1560 = vmatprep.subr.bf16.mxu1 %v1559_v63  ;;  %v1081_v63 = vmul.f32 1.442695, %v2666_v36  ;;  %v2671_v61 = vsub.f32 %v2608_v7, %v2151_v13  ;;  %v2672_v9 = vsub.f32 %v2609_v35, %v2155_v1 }
 0x21a   : > { %v1674_v59 = vpop.eup %1673  ;;  %1693 = vpow2.f32 %v1053_v33  ;;  %v1565_v18 = vpack.c.bf16 %v1672_v37, %v1668_v8  ;;  %1562 = vmatpush1.bf16.msra.mxu1 %v1561_v39  ;;  %v1075_v8 = vmul.f32 1.442695, %v2663_v30  ;;  %v1085_v39 = vmul.f32 1.442695, %v2668_v49 }
 0x21b   : > { %v1676_v42 = vpop.eup %1675  ;;  %1695 = vpow2.f32 %v1055_v46  ;;  %v1563_v38 = vpack.c.bf16 %v1674_v59, %v1670_v19  ;;  %v1077_v46 = vmul.f32 1.442695, %v2664_v32  ;;  %v1079_v19 = vmul.f32 1.442695, %v2665_v34 }
 0x21c   : > { %v1678_v62 = vpop.eup %1677  ;;  %1697 = vpow2.f32 %v1057_v54  ;;  %v1089_v27 = vmul.f32 1.442695, %v2670_v57  ;;  %v1093_v20 = vmul.f32 1.442695, %v2672_v9  ;;  %v2673_v5 = vsub.f32 %v2610_v15, %v2151_v13 }
 0x21d   : > { %v1680_v41 = vpop.eup %1679  ;;  %1699 = vpow2.f32 %v1059_v60  ;;  %1564 = vmatprep.subr.bf16.mxu1 %v1563_v38  ;;  %v1091_v38 = vmul.f32 1.442695, %v2671_v61  ;;  %v2674_v7 = vsub.f32 %v2611_v44, %v2155_v1  ;;  %v2675_v35 = vsub.f32 %v2612_v51, %v2151_v13 }
 0x21e   : > { %v1682_v2 = vpop.eup %1681  ;;  %1701 = vpow2.f32 %v1061_v40  ;;  %v1569_v25 = vpack.c.bf16 %v1680_v41, %v1676_v42  ;;  %1566 = vmatpush1.bf16.msra.mxu1 %v1565_v18  ;;  %v1087_v40 = vmul.f32 1.442695, %v2669_v53  ;;  %v1095_v22 = vmul.f32 1.442695, %v2673_v5 }
 0x21f   : > { %v1684_v4 = vpop.eup %1683  ;;  %1703 = vpow2.f32 %v1063_v58  ;;  %v1567_v21 = vpack.c.bf16 %v1682_v2, %v1678_v62  ;;  %v1097_v24 = vmul.f32 1.442695, %v2674_v7  ;;  %v2676_v15 = vsub.f32 %v2613_v55, %v2155_v1  ;;  %v2680_v55 = vld [vmem:[#allocation15_spill] sm:$0xff] }
 0x220   : > { %v1686_v6 = vpop.eup %1685  ;;  %1705 = vpow2.f32 %v1065_v0  ;;  %v2677_v44 = vsub.f32 %v2614_v48, %v2151_v13 }
 0x221   : > { %v1688_v33 = vpop.eup %1687  ;;  %1707 = vpow2.f32 %v1067_v17  ;;  %1568 = vmatprep.subr.bf16.mxu1 %v1567_v21  ;;  %v1101_v26 = vmul.f32 1.442695, %v2676_v15 }
 0x222   : > { %v1690_v52 = vpop.eup %1689  ;;  %1709 = vpow2.f32 %v1069_v43  ;;  %v1573_v10 = vpack.c.bf16 %v1688_v33, %v1684_v4  ;;  %1570 = vmatpush1.bf16.msra.mxu1 %v1569_v25  ;;  %v1099_v25 = vmul.f32 1.442695, %v2675_v35  ;;  %v2678_v33 = vld [vmem:[#allocation14_spill] sm:$0xff] }
 0x223   : > { %v1692_v54 = vpop.eup %1691  ;;  %1711 = vpow2.f32 %v1071_v47  ;;  %v1571_v12 = vpack.c.bf16 %v1690_v52, %v1686_v6  ;;  %v1103_v6 = vmul.f32 1.442695, %v2677_v44  ;;  %v2679_v51 = vsub.f32 %v2678_v33, %v2155_v1 }
 0x224   : > { %v1694_v56 = vpop.eup %1693  ;;  %1713 = vpow2.f32 %v1073_v50  ;;  %v2681_v52 = vsub.f32 %v2680_v55, %v2151_v13  ;;  %v2704_v55 = vld [vmem:[#allocation29_spill] sm:$0xff] }
 0x225   : > { %v1696_v37 = vpop.eup %1695  ;;  %1715 = vpow2.f32 %v1075_v8  ;;  %1572 = vmatprep.subr.bf16.mxu1 %v1571_v12  ;;  %v1105_v30 = vmul.f32 1.442695, %v2679_v51  ;;  %v2684_v12 = vld [vmem:[#allocation17_spill] sm:$0xff] }
 0x226   : > { %v1698_v60 = vpop.eup %1697  ;;  %1717 = vpow2.f32 %v1077_v46  ;;  %v1577_v59 = vpack.c.bf16 %v1696_v37, %v1692_v54  ;;  %1574 = vmatpush1.bf16.msra.mxu1 %v1573_v10  ;;  %v1107_v32 = vmul.f32 1.442695, %v2681_v52  ;;  %v2682_v10 = vld [vmem:[#allocation16_spill] sm:$0xff]  ;;  %v2705_v52 = vsub.f32 %v2704_v55, %v2151_v13 }
 0x227   : > { %v1700_v16 = vpop.eup %1699  ;;  %1719 = vpow2.f32 %v1079_v19  ;;  %v1575_v18 = vpack.c.bf16 %v1698_v60, %v1694_v56  ;;  %v2683_v48 = vsub.f32 %v2682_v10, %v2155_v1  ;;  %v2685_v56 = vsub.f32 %v2684_v12, %v2151_v13 }
 0x228   : > { %v1702_v42 = vpop.eup %1701  ;;  %1721 = vpow2.f32 %v1081_v63 }
 0x229   : > { %v1704_v58 = vpop.eup %1703  ;;  %1723 = vpow2.f32 %v1083_v14  ;;  %1576 = vmatprep.subr.bf16.mxu1 %v1575_v18  ;;  %v1109_v54 = vmul.f32 1.442695, %v2683_v48  ;;  %v1111_v36 = vmul.f32 1.442695, %v2685_v56  ;;  %v2687_v14 = vsub.f32 %v2686_v45, %v2155_v1 }
 0x22a   : > { %v1706_v62 = vpop.eup %1705  ;;  %1725 = vpow2.f32 %v1085_v39  ;;  %v1581_v0 = vpack.c.bf16 %v1704_v58, %v1700_v16  ;;  %1578 = vmatpush1.bf16.msra.mxu1 %v1577_v59  ;;  %v2688_v39 = vld [vmem:[#allocation19_spill] sm:$0xff]  ;;  %v2692_v58 = vld [vmem:[#allocation21_spill] sm:$0xff] }
 0x22b   : > { %v1708_v41 = vpop.eup %1707  ;;  %1727 = vpow2.f32 %v1087_v40  ;;  %v1579_v17 = vpack.c.bf16 %v1706_v62, %v1702_v42  ;;  %v1113_v60 = vmul.f32 1.442695, %v2687_v14  ;;  %v2689_v59 = vsub.f32 %v2688_v39, %v2151_v13  ;;  %v2690_v40 = vld [vmem:[#allocation20_spill] sm:$0xff] }
 0x22c   : > { %v1710_v2 = vpop.eup %1709  ;;  %1729 = vpow2.f32 %v1089_v27  ;;  %v2691_v18 = vsub.f32 %v2690_v40, %v2155_v1  ;;  %v2693_v61 = vsub.f32 %v2692_v58, %v2151_v13  ;;  %v401_v40 = vld [vmem:[%s2130_s8] sm:$0xff]  ;;  %v407_v58 = vld [vmem:[%s2130_s8 + $0x30] sm:$0xff] }
 0x22d   : > { %v1712_v43 = vpop.eup %1711  ;;  %1731 = vpow2.f32 %v1091_v38  ;;  %1580 = vmatprep.subr.bf16.mxu1 %v1579_v17  ;;  %v1115_v16 = vmul.f32 1.442695, %v2689_v59 }
 0x22e   : > { %v1714_v4 = vpop.eup %1713  ;;  %1733 = vpow2.f32 %v1093_v20  ;;  %v1585_v47 = vpack.c.bf16 %v1712_v43, %v1708_v41  ;;  %1582 = vmatpush1.bf16.msra.mxu1 %v1581_v0  ;;  %v1117_v42 = vmul.f32 1.442695, %v2691_v18  ;;  %v1119_v38 = vmul.f32 1.442695, %v2693_v61  ;;  %v2694_v20 = vld [vmem:[#allocation22_spill] sm:$0xff] }
 0x22f   : > { %v1716_v21 = vpop.eup %1715  ;;  %1735 = vpow2.f32 %v1095_v22  ;;  %v1583_v28 = vpack.c.bf16 %v1714_v4, %v1710_v2  ;;  %v2695_v0 = vsub.f32 %v2694_v20, %v2155_v1  ;;  %v2696_v22 = vld [vmem:[#allocation23_spill] sm:$0xff]  ;;  %v2699_v4 = vsub.f32 %v2626_v3, %v2151_v13  ;;  %v404_v18 = vld [vmem:[%s2130_s8 + $0x18] sm:$0xff] }
 0x230   : > { %v1718_v50 = vpop.eup %1717  ;;  %1737 = vpow2.f32 %v1097_v24  ;;  %v2697_v17 = vsub.f32 %v2696_v22, %v2151_v13  ;;  %v2698_v24 = vsub.f32 %v2625_v29, %v2155_v1  ;;  %v2702_v29 = vsub.f32 %v2628_v23, %v2151_v13  ;;  %v410_v61 = vld [vmem:[%s2130_s8 + $0x48] sm:$0x1] }
 0x231   : > { %v1720_v8 = vpop.eup %1719  ;;  %1739 = vpow2.f32 %v1099_v25  ;;  %1584 = vmatprep.subr.bf16.mxu1 %v1583_v28  ;;  %v1121_v41 = vmul.f32 1.442695, %v2695_v0  ;;  %v1127_v15 = vmul.f32 1.442695, %v2699_v4  ;;  %v2703_v3 = vsub.f32 %v2629_v31, %v2155_v1 }
 0x232   : > { %v1722_v46 = vpop.eup %1721  ;;  %1741 = vpow2.f32 %v1101_v26  ;;  %v1589_v34 = vpack.c.bf16 %v1720_v8, %v1716_v21  ;;  %1586 = vmatpush1.bf16.msra.mxu1 %v1585_v47  ;;  %v1123_v2 = vmul.f32 1.442695, %v2697_v17  ;;  %v1125_v43 = vmul.f32 1.442695, %v2698_v24  ;;  %v2700_v21 = vld [vmem:[#allocation26_spill] sm:$0xff]  ;;  %v2710_v17 = vld [vmem:[#allocation32_spill] sm:$0xff] }
 0x233   : > { %v1724_v19 = vpop.eup %1723  ;;  %1743 = vpow2.f32 %v1103_v6  ;;  %v1587_v63 = vpack.c.bf16 %v1722_v46, %v1718_v50  ;;  %v2701_v44 = vsub.f32 %v2700_v21, %v2155_v1  ;;  %v1131_v50 = vmul.f32 1.442695, %v2702_v29 }
 0x234   : > { %v1726_v37 = vpop.eup %1725  ;;  %1745 = vpow2.f32 %v1105_v30  ;;  %v1133_v51 = vmul.f32 1.442695, %v2703_v3 }
 0x235   : > { %v1728_v49 = vpop.eup %1727  ;;  %1747 = vpow2.f32 %v1107_v32  ;;  %1588 = vmatprep.subr.bf16.mxu1 %v1587_v63  ;;  %v1129_v6 = vmul.f32 1.442695, %v2701_v44  ;;  %v1135_v32 = vmul.f32 1.442695, %v2705_v52 }
 0x236   : > { %v1730_v53 = vpop.eup %1729  ;;  %1749 = vpow2.f32 %v1109_v54  ;;  %v1593_v57 = vpack.c.bf16 %v1728_v49, %v1724_v19  ;;  %1590 = vmatpush1.bf16.msra.mxu1 %v1589_v34 }
 0x237   : > { %v1732_v27 = vpop.eup %1731  ;;  %1751 = vpow2.f32 %v1111_v36  ;;  %v1591_v62 = vpack.c.bf16 %v1730_v53, %v1726_v37 }
 0x238   : > { %v1734_v9 = vpop.eup %1733  ;;  %1753 = vpow2.f32 %v1113_v60 }
 0x239   : > { %v1736_v5 = vpop.eup %1735  ;;  %1755 = vpow2.f32 %v1115_v16  ;;  %1592 = vmatprep.subr.bf16.mxu1 %v1591_v62  ;;  %v2706_v62 = vld [vmem:[#allocation30_spill] sm:$0xff] }
 0x23a   : > { %v1738_v7 = vpop.eup %1737  ;;  %1757 = vpow2.f32 %v1117_v42  ;;  %v1597_v35 = vpack.c.bf16 %v1736_v5, %v1732_v27  ;;  %1594 = vmatpush1.bf16.msra.mxu1 %v1593_v57  ;;  %v403_v42 = vld [vmem:[%s2130_s8 + $0x10] sm:$0xff]  ;;  %v406_v57 = vld [vmem:[%s2130_s8 + $0x28] sm:$0xff]  ;;  %v405_v27 = vld [vmem:[%s2130_s8 + $0x20] sm:$0xff] }
 0x23b   : > { %v1740_v25 = vpop.eup %1739  ;;  %1759 = vpow2.f32 %v1119_v38  ;;  %v1595_v26 = vpack.c.bf16 %v1738_v7, %v1734_v9  ;;  %v409_v38 = vld [vmem:[%s2130_s8 + $0x40] sm:$0x1]  ;;  %v2707_v9 = vld [vmem:[#allocation33_spill] sm:$0xff]  ;;  %v2709_v5 = vld [vmem:[#allocation31_spill] sm:$0xff] }
 0x23c   : > { %v1742_v47 = vpop.eup %1741  ;;  %1761 = vpow2.f32 %v1121_v41  ;;  %v2708_v20 = vsub.f32 %v2706_v62, %v2707_v9 }
 0x23d   : > { %v1744_v28 = vpop.eup %1743  ;;  %1763 = vpow2.f32 %v1123_v2  ;;  %1596 = vmatprep.subr.bf16.mxu1 %v1595_v26 }
 0x23e   : > { %v1746_v33 = vpop.eup %1745  ;;  %1765 = vpow2.f32 %v1125_v43  ;;  %v1601_v30 = vpack.c.bf16 %v1744_v28, %v1740_v25  ;;  %1598 = vmatpush1.bf16.msra.mxu1 %v1597_v35  ;;  %v934_v0 = vmul.f32 1.442695, %v2708_v20 }
 0x23f   : > { %v1748_v8 = vpop.eup %1747  ;;  %1767 = vpow2.f32 %v1127_v15  ;;  %v1599_v46 = vpack.c.bf16 %v1746_v33, %v1742_v47  ;;  %v1152_v33 = vld [vmem:[#allocation3 + $0x40] sm:$0x1] }
 0x240   : > { %v1750_v10 = vpop.eup %1749  ;;  %1769 = vpow2.f32 %v1129_v6 }
 0x241   : > { %v1752_v23 = vpop.eup %1751  ;;  %1771 = vpow2.f32 %v1131_v50  ;;  %1600 = vmatprep.subr.bf16.mxu1 %v1599_v46 }
 0x242   : > { %v1754_v48 = vpop.eup %1753  ;;  %1773 = vpow2.f32 %v1133_v51  ;;  %v1605_v54 = vpack.c.bf16 %v1752_v23, %v1748_v8  ;;  %1602 = vmatpush1.bf16.msra.mxu1 %v1601_v30  ;;  %v1153_v30 = vld [vmem:[#allocation3 + $0x48] sm:$0x1] }
 0x243   : > { %v1756_v34 = vpop.eup %1755  ;;  %1775 = vpow2.f32 %v1135_v32  ;;  %v1603_v1 = vpack.c.bf16 %v1754_v48, %v1750_v10 }
 0x244   : > { %v1758_v31 = vpop.eup %1757  ;;  %1777 = vpow2.f32 %v934_v0 }
 0x245   : > { %v1760_v19 = vpop.eup %1759  ;;  %1604 = vmatprep.subr.bf16.mxu1 %v1603_v1 }
 0x246   : > { %v1762_v12 = vpop.eup %1761  ;;  %v1609_v13 = vpack.c.bf16 %v1760_v19, %v1756_v34  ;;  %1606 = vmatpush1.bf16.msra.mxu1 %v1605_v54  ;;  %v1333_v19 = vld [vmem:[%s338_s13] sm:$0xff] }
 0x247   : > { %v1764_v56 = vpop.eup %1763  ;;  %v1607_v36 = vpack.c.bf16 %v1762_v12, %v1758_v31  ;;  %v1324_v31 = vstv %s1323_s9  ;;  %v1334_v12 = vld [vmem:[%s338_s13 + $0x8] sm:$0xff] }
 0x248   : > { %v1766_v63 = vpop.eup %1765 }
 0x249   : > { %v1768_v37 = vpop.eup %1767  ;;  %1608 = vmatprep.subr.bf16.mxu1 %v1607_v36 }
 0x24a   : > { %v1770_v45 = vpop.eup %1769  ;;  %v1613_v14 = vpack.c.bf16 %v1768_v37, %v1764_v56  ;;  %1610 = vmatpush1.bf16.msra.mxu1 %v1609_v13  ;;  %v1335_v37 = vld [vmem:[%s338_s13 + $0x10] sm:$0xff] }
 0x24b   : > { %v1772_v60 = vpop.eup %1771  ;;  %v1611_v49 = vpack.c.bf16 %v1770_v45, %v1766_v63  ;;  %v1336_v45 = vld [vmem:[%s338_s13 + $0x18] sm:$0xff] }
 0x24c   : > { %v1774_v39 = vpop.eup %1773 }
 0x24d   : > { %v1776_v59 = vpop.eup %1775  ;;  %v1615_v16 = vpack.c.bf16 %v2326_v11, %v1774_v39  ;;  %1612 = vmatprep.subr.bf16.mxu1 %v1611_v49  ;;  %v408_v11 = vld [vmem:[%s2130_s8 + $0x38] sm:$0xff] }
 0x24e   : > { %v1617_v53 = vpack.c.bf16 %v1776_v59, %v1772_v60  ;;  %1614 = vmatpush1.bf16.msra.mxu1 %v1613_v14  ;;  %v1778_v41 = vpop.eup %1777  ;;  %v1337_v14 = vld [vmem:[%s338_s13 + $0x20] sm:$0xff] }
 0x24f   : > { %1616 = vmatprep.subr.bf16.mxu1 %v1615_v16  ;;  %v1158_v22 = vrot.slane %v1778_v41, %v2709_v5  ;;  %v1162_v2 = vrot.slane %v1778_v41, %v2710_v17  ;;  %v1338_v16 = vld [vmem:[%s338_s13 + $0x28] sm:$0xff] }
 0x251   : > { %v1165_v7 = vmul.f32 0.0, %v1158_v22  ;;  %v1166_v43 = vmul.f32 0.0, %v1162_v2  ;;  %v1173_v55 = vmul.f32 %v1158_v22, %v1152_v33  ;;  %v1174_v32 = vmul.f32 %v1162_v2, %v1153_v30 }
 0x252   : > { %1618 = vmatpush1.bf16.msra.mxu1 %v1617_v53  ;;  %v1339_v53 = vld [vmem:[%s338_s13 + $0x30] sm:$0xff] }
 0x255   : > { %1240 = vmatmul.mubr.f32.vlgmr.msra.gmra.mrb[0].mxu1 %v401_v40  ;;  %v1340_v40 = vld [vmem:[%s338_s13 + $0x38] sm:$0xff] }
 0x256   : > { %1245 = vmatprep.mubr.f32.mxu1 %v404_v18 }
 0x259   : > { %1246 = vmatmul.mubr.f32.gmra.mrb[2].mxu1 %v403_v42 }
 0x25a   : > { %1251 = vmatprep.mubr.f32.mxu1 %v406_v57 }
 0x25d   : > { %1252 = vmatmul.mubr.f32.gmra.mrb[4].mxu1 %v405_v27 }
 0x25e   : > { %1257 = vmatprep.mubr.f32.mxu1 %v408_v11 }
 0x261   : > { %1258 = vmatmul.mubr.f32.gmra.mrb[6].mxu1 %v407_v58 }
 0x262   : > { %1263 = vmatprep.mubr.f32.mxu1 %v410_v61 }
 0x265   : > { %1264 = vmatmul.mubr.f32.gmra.mrb[8].mxu1 %v409_v38 }
 0x328   : > { %v1241_v24 = vpop.f32.mrb[0].mxu1 }
 0x329   : > { %v1270_v35 = vadd.f32 %v1241_v24, %v1165_v7  ;;  %v1243_v25 = vpop.f32.mrb[1].mxu1 }
 0x32a   : > { %v1271_v4 = vadd.f32 %v1243_v25, %v1166_v43 }
 0x32c   : > { %v1247_v15 = vpop.f32.mrb[2].mxu1 }
 0x32d   : > { %v1272_v26 = vadd.f32 %v1247_v15, %v1165_v7  ;;  %v1249_v47 = vpop.f32.mrb[3].mxu1 }
 0x32e   : > { %v1273_v21 = vadd.f32 %v1249_v47, %v1166_v43 }
 0x330   : > { %v1253_v44 = vpop.f32.mrb[4].mxu1 }
 0x331   : > { %v1274_v6 = vadd.f32 %v1253_v44, %v1165_v7  ;;  %v1255_v28 = vpop.f32.mrb[5].mxu1 }
 0x332   : > { %v1275_v29 = vadd.f32 %v1255_v28, %v1166_v43 }
 0x334   : > { %v1259_v50 = vpop.f32.mrb[6].mxu1 }
 0x335   : > { %v1276_v3 = vadd.f32 %v1259_v50, %v1165_v7  ;;  %v1261_v51 = vpop.f32.mrb[7].mxu1 }
 0x336   : > { %v1277_v8 = vadd.f32 %v1261_v51, %v1166_v43 }
 0x338   : > { %v1265_v52 = vpop.f32.mrb[8].mxu1 }
 0x339   : > { %v1278_v46 = vadd.f32 %v1265_v52, %v1173_v55  ;;  %v1267_v10 = vpop.f32.mrb[9].mxu1 }
 0x33a   : > { %v1279_v23 = vadd.f32 %v1267_v10, %v1174_v32 }
 0x33b   : > { %1288 = vst [vmem:[#allocation3 + $0x40] sm:$0x1] %v1278_v46 }
 0x33c   : > { %1289 = vst [vmem:[#allocation3 + $0x48] sm:$0x1] %v1279_v23 }
 0x343   : > { %v1294_v48 = vld [vmem:[#allocation3 + $0x40] ss:$8 sm:$0x3] }
 0x344   : > { %1779 = vrcp.f32 %v1294_v48 }
 0x34e   : > { %v1780_v54 = vpop.eup %1779 }
 0x34f   : > { %v1308_v34 = vrot.slane %v1780_v54, %v2709_v5  ;;  %v1312_v1 = vrot.slane %v1780_v54, %v2710_v17 }
 0x351   : > { %v1315_v13 = vmul.f32 %v1308_v34, %v1270_v35  ;;  %v1316_v56 = vmul.f32 %v1312_v1, %v1271_v4  ;;  %v1317_v36 = vmul.f32 %v1308_v34, %v1272_v26  ;;  %v1318_v63 = vmul.f32 %v1312_v1, %v1273_v21 }
 0x352   : > { %v1319_v60 = vmul.f32 %v1308_v34, %v1274_v6  ;;  %v1320_v49 = vmul.f32 %v1312_v1, %v1275_v29  ;;  %v1321_v39 = vmul.f32 %v1308_v34, %v1276_v3  ;;  %v1322_v59 = vmul.f32 %v1312_v1, %v1277_v8 }
 0x353   : > { %v1325_v18 = vmul.f32 %v1324_v31, %v1315_v13  ;;  %v1326_v42 = vmul.f32 %v1324_v31, %v1316_v56  ;;  %v1327_v57 = vmul.f32 %v1324_v31, %v1317_v36  ;;  %v1328_v27 = vmul.f32 %v1324_v31, %v1318_v63 }
 0x354   : > { %v1329_v11 = vmul.f32 %v1324_v31, %v1319_v60  ;;  %v1330_v58 = vmul.f32 %v1324_v31, %v1320_v49  ;;  %v1331_v61 = vmul.f32 %v1324_v31, %v1321_v39  ;;  %v1332_v38 = vmul.f32 %v1324_v31, %v1322_v59 }
 0x355   : > { %v1341_v62 = vadd.f32 %v1333_v19, %v1325_v18  ;;  %v1342_v9 = vadd.f32 %v1334_v12, %v1326_v42  ;;  %v1343_v20 = vadd.f32 %v1335_v37, %v1327_v57  ;;  %v1344_v0 = vadd.f32 %v1336_v45, %v1328_v27 }
 0x356   : > { %v1345_v41 = vadd.f32 %v1337_v14, %v1329_v11  ;;  %v1346_v5 = vadd.f32 %v1338_v16, %v1330_v58  ;;  %v1347_v22 = vadd.f32 %v1339_v53, %v1331_v61  ;;  %v1348_v17 = vadd.f32 %v1340_v40, %v1332_v38 }
 0x357   : > { %1349 = vst [vmem:[%s378_s16] sm:$0xff] %v1341_v62  ;;  %1350 = vst [vmem:[%s378_s16 + $0x8] sm:$0xff] %v1342_v9 }
 0x358   : > { %1351 = vst [vmem:[%s378_s16 + $0x10] sm:$0xff] %v1343_v20  ;;  %1352 = vst [vmem:[%s378_s16 + $0x18] sm:$0xff] %v1344_v0 }
 0x359   : > { %1353 = vst [vmem:[%s378_s16 + $0x20] sm:$0xff] %v1345_v41  ;;  %1354 = vst [vmem:[%s378_s16 + $0x28] sm:$0xff] %v1346_v5 }
 0x35a   : > { %1355 = vst [vmem:[%s378_s16 + $0x30] sm:$0xff] %v1347_v22  ;;  %1356 = vst [vmem:[%s378_s16 + $0x38] sm:$0xff] %v1348_v17 }
 0x35b PF: > { %s16_s22 = sadd.s32 1, %s1803_s22   ;;  %s2711_s20 = smov %s1799_s21 }
 0x35c   : > { %p13_p5 = scmp.ge.s32.totalorder %s16_s22, 4   ;;  %s2712_s21 = smov %s2714_s0 }
 0x35e   :  { %15 = sbr.rel (!%p13_p5) target bundleno = 2 (0x2), region = 88 }

</bundles_post_ra>
